<compile_context>
chip_gen: v5e
topology: v5e:2x2
jax: 0.10.0
libtpu: 0.0.40
codegen_flags: <defaults>
</compile_context>

<pallas_src>
import jax
import jax.numpy as jnp
from jax.experimental import pallas as pl
from jax.experimental.pallas import tpu as pltpu

IN_DIM = 13
HIDDEN = 64
OUT_DIM = 1


def mlp_kernel(x_ref, w1_ref, b1_ref, w2_ref, b2_ref, w3_ref, b3_ref, o_ref):
    """Fused 3-layer MLP for one batch tile (batch-on-lanes layout).

    x_ref : (13, tile_b) f32   (cast to bf16 in-kernel for the MXU)
    w1_ref: (64, 13) bf16      b1_ref: (64, 1) f32
    w2_ref: (64, 64) bf16      b2_ref: (64, 1) f32
    w3_ref: (1, 64)  f32       b3_ref: (1, 1)  f32
    o_ref : (1, tile_b) f32 -- lane-dense output row (batch along lanes)
    """
    x = x_ref[...].astype(jnp.bfloat16)  # cheap VPU cast; keeps x DMA in f32

    # Layer 1: (64,13)@(13,tile_b) -> (64,tile_b); bf16 operands, f32 accumulation.
    h1 = jnp.dot(w1_ref[...], x, preferred_element_type=jnp.float32)
    h1 = jnp.maximum(h1 + b1_ref[...], 0.0)

    # Layer 2: (64,64)@(64,tile_b) -> (64,tile_b); N=tile_b fills the MXU output width.
    h2 = jnp.dot(w2_ref[...], h1.astype(jnp.bfloat16),
                 preferred_element_type=jnp.float32)
    h2 = jnp.maximum(h2 + b2_ref[...], 0.0)

    # Layer 3: (1,64)@(64,tile_b) -> (1,tile_b).  No trans-B / no XLU transpose; the
    # result is already the lane-dense output row.  Kept in f32 for fidelity (it is a
    # negligible fraction of total MACs).
    y = jnp.dot(w3_ref[...], h2, preferred_element_type=jnp.float32)
    o_ref[...] = (y + b3_ref[...]).astype(o_ref.dtype)


def _round_up(n, m):
    return ((n + m - 1) // m) * m


def neural_network_forward(x, params, *, tile_b=None):
    """Pallas forward pass of NeuralNetwork(hidden_dim=64): (B, 13) -> (B, 1).

    `params` are in PyTorch layout: W_i of shape (out_features, in_features),
    b_i of shape (out_features,).
    """
    w1, b1, w2, b2, w3, b3 = params
    B = x.shape[0]
    assert x.shape[1] == IN_DIM

    if tile_b is None:
        # Single tile (one grid step) for batches up to 4096 rows; larger batches
        # stream 4096-row tiles on a "parallel" axis (2-TC sharding on v7x).
        tile_b = min(4096, _round_up(max(B, 1), 256))
    # Multiple of 256: whole 128-lane vregs for the output row and an MXU-aligned N.
    tile_b = max(256, _round_up(tile_b, 256))

    b_padded = _round_up(B, tile_b)
    num_tiles = b_padded // tile_b

    # Batch-on-lanes input: (13, b_padded).  Transpose + (<tile_b columns) pad fuse
    # into a single XLA copy; padded columns are discarded after the call.
    xt = x.T
    if b_padded != B:
        xt = jnp.pad(xt, ((0, 0), (0, b_padded - B)))

    # One-off weight prep (tiny arrays): bf16 MXU operands for the hidden layers,
    # column-shaped biases that broadcast over the lane (batch) axis.
    w1b = w1.astype(jnp.bfloat16)                           # (64, 13)
    w2b = w2.astype(jnp.bfloat16)                           # (64, 64)
    w3r = w3.reshape(OUT_DIM, HIDDEN).astype(jnp.float32)   # (1, 64)
    b1c = b1.reshape(HIDDEN, 1).astype(jnp.float32)
    b2c = b2.reshape(HIDDEN, 1).astype(jnp.float32)
    b3c = b3.reshape(OUT_DIM, 1).astype(jnp.float32)

    def const(shape):
        # Resident block: constant index_map -> DMA'd once, reused across all steps.
        return pl.BlockSpec(shape, lambda i, _n=len(shape): (0,) * _n)

    out = pl.pallas_call(
        mlp_kernel,
        out_shape=jax.ShapeDtypeStruct((OUT_DIM, b_padded), jnp.float32),
        grid_spec=pltpu.PrefetchScalarGridSpec(
            num_scalar_prefetch=0,
            grid=(num_tiles,),
            in_specs=[
                pl.BlockSpec((IN_DIM, tile_b), lambda i: (0, i)),  # streamed x tile
                const((HIDDEN, IN_DIM)),   # w1 (bf16)
                const((HIDDEN, 1)),        # b1
                const((HIDDEN, HIDDEN)),   # w2 (bf16)
                const((HIDDEN, 1)),        # b2
                const((OUT_DIM, HIDDEN)),  # w3 (f32)
                const((OUT_DIM, 1)),       # b3
            ],
            out_specs=pl.BlockSpec((OUT_DIM, tile_b), lambda i: (0, i)),
        ),
        compiler_params=pltpu.CompilerParams(
            dimension_semantics=("parallel",),
        ),
    )(xt, w1b, b1c, w2b, b2c, w3r, b3c)

    # (1, b_padded) lane-dense row -> (B, 1), dropping padded columns.
    return out[0, :B].reshape(B, OUT_DIM)


def init_params(key):
    """Deterministic init mimicking PyTorch Linear default (uniform +/- 1/sqrt(fan_in)).

    Weights are stored in PyTorch layout: (out_features, in_features).
    """
    ks = jax.random.split(key, 6)

    def linear(kw, kb, fan_in, fan_out):
        bound = float(1.0 / (fan_in ** 0.5))
        w = jax.random.uniform(kw, (fan_out, fan_in), jnp.float32, -bound, bound)
        b = jax.random.uniform(kb, (fan_out,), jnp.float32, -bound, bound)
        return w, b

    w1, b1 = linear(ks[0], ks[1], IN_DIM, HIDDEN)
    w2, b2 = linear(ks[2], ks[3], HIDDEN, HIDDEN)
    w3, b3 = linear(ks[4], ks[5], HIDDEN, OUT_DIM)
    return (w1, b1, w2, b2, w3, b3)


def reference_forward(x, params):
    """Pure-JAX reference mirroring the kernel's precision (bf16 operands, f32 accum)."""
    w1, b1, w2, b2, w3, b3 = params
    hi = jax.lax.Precision.HIGHEST
    h1 = jnp.dot(x.astype(jnp.bfloat16), w1.T.astype(jnp.bfloat16),
                 preferred_element_type=jnp.float32, precision=hi)
    h1 = jnp.maximum(h1 + b1, 0.0)
    h2 = jnp.dot(h1.astype(jnp.bfloat16), w2.T.astype(jnp.bfloat16),
                 preferred_element_type=jnp.float32, precision=hi)
    h2 = jnp.maximum(h2 + b2, 0.0)
    return jnp.dot(h2, w3.T, preferred_element_type=jnp.float32, precision=hi) + b3


if __name__ == "__main__":
    key = jax.random.PRNGKey(0)
    k_params, k_x = jax.random.split(key)

    params = init_params(k_params)

    # Small shapes consistent with the module: (batch, 13) feature rows.
    #   batch=8              -> single grid step, mostly-padded lane tile
    #   batch=517, tile=256  -> ragged batch, multi-step "parallel" grid
    #   batch=2005           -> default heuristic (single 2048-wide tile)
    for batch, tile in ((8, None), (517, 256), (2005, None)):
        x = jax.random.normal(jax.random.fold_in(k_x, batch), (batch, IN_DIM),
                              jnp.float32)
        out = jax.block_until_ready(neural_network_forward(x, params, tile_b=tile))
        ref = reference_forward(x, params)
        assert out.shape == (batch, OUT_DIM)
        assert jnp.allclose(out, ref, atol=2e-3, rtol=2e-3), (
            "max abs diff", float(jnp.max(jnp.abs(out - ref))))

    print("KERNEL_OK")
</pallas_src>

<mosaic_0001>
module attributes {stable_mosaic.version = 11 : i64} {
  func.func @mlp_kernel(%arg0: i32, %arg1: memref<13x256xf32, #tpu.memory_space<vmem>>, %arg2: memref<64x13xbf16, #tpu.memory_space<vmem>>, %arg3: memref<64x1xf32, #tpu.memory_space<vmem>>, %arg4: memref<64x64xbf16, #tpu.memory_space<vmem>>, %arg5: memref<64x1xf32, #tpu.memory_space<vmem>>, %arg6: memref<1x64xf32, #tpu.memory_space<vmem>>, %arg7: memref<1x1xf32, #tpu.memory_space<vmem>>, %arg8: memref<1x256xf32, #tpu.memory_space<vmem>>) attributes {dimension_semantics = [#tpu.dimension_semantics<parallel>], iteration_bounds = array<i64: 1>, scalar_prefetch = 0 : i64, scratch_operands = 0 : i64, tpu.core_type = #tpu.core_type<tc>, window_params = [{transform_indices = @transform_0, window_bounds = array<i64: 13, 256>}, {pipeline_mode = #tpu.pipeline_mode<synchronous>, transform_indices = @transform_1, window_bounds = array<i64: 64, 13>}, {pipeline_mode = #tpu.pipeline_mode<synchronous>, transform_indices = @transform_2, window_bounds = array<i64: 64, 1>}, {pipeline_mode = #tpu.pipeline_mode<synchronous>, transform_indices = @transform_3, window_bounds = array<i64: 64, 64>}, {pipeline_mode = #tpu.pipeline_mode<synchronous>, transform_indices = @transform_4, window_bounds = array<i64: 64, 1>}, {pipeline_mode = #tpu.pipeline_mode<synchronous>, transform_indices = @transform_5, window_bounds = array<i64: 1, 64>}, {pipeline_mode = #tpu.pipeline_mode<synchronous>, transform_indices = @transform_6, window_bounds = array<i64: 1, 1>}, {transform_indices = @transform_7, window_bounds = array<i64: 1, 256>}]} {
    %c0 = arith.constant 0 : index
    %c0_0 = arith.constant 0 : index
    %0 = vector.load %arg1[%c0, %c0_0] : memref<13x256xf32, #tpu.memory_space<vmem>>, vector<13x256xf32>
    %1 = arith.truncf %0 : vector<13x256xf32> to vector<13x256xbf16>
    %c0_1 = arith.constant 0 : index
    %c0_2 = arith.constant 0 : index
    %2 = vector.load %arg2[%c0_1, %c0_2] : memref<64x13xbf16, #tpu.memory_space<vmem>>, vector<64x13xbf16>
    %cst = arith.constant dense<0.000000e+00> : vector<64x256xf32>
    %3 = tpu.matmul %2, %1, %cst {dimension_numbers = #tpu.dot_dimension_numbers<[1], [0], [0], [1], [0, 0, 1, 1], [], []>} : vector<64x13xbf16>, vector<13x256xbf16>, vector<64x256xf32> -> vector<64x256xf32>
    %c0_3 = arith.constant 0 : index
    %c0_4 = arith.constant 0 : index
    %4 = vector.load %arg3[%c0_3, %c0_4] : memref<64x1xf32, #tpu.memory_space<vmem>>, vector<64x1xf32>
    %5 = vector.broadcast %4 : vector<64x1xf32> to vector<64x256xf32>
    %6 = arith.addf %3, %5 : vector<64x256xf32>
    %cst_5 = arith.constant 0.000000e+00 : f32
    %7 = vector.broadcast %cst_5 : f32 to vector<64x256xf32>
    %8 = arith.maximumf %6, %7 : vector<64x256xf32>
    %c0_6 = arith.constant 0 : index
    %c0_7 = arith.constant 0 : index
    %9 = vector.load %arg4[%c0_6, %c0_7] : memref<64x64xbf16, #tpu.memory_space<vmem>>, vector<64x64xbf16>
    %10 = arith.truncf %8 : vector<64x256xf32> to vector<64x256xbf16>
    %cst_8 = arith.constant dense<0.000000e+00> : vector<64x256xf32>
    %11 = tpu.matmul %9, %10, %cst_8 {dimension_numbers = #tpu.dot_dimension_numbers<[1], [0], [0], [1], [0, 0, 1, 1], [], []>} : vector<64x64xbf16>, vector<64x256xbf16>, vector<64x256xf32> -> vector<64x256xf32>
    %c0_9 = arith.constant 0 : index
    %c0_10 = arith.constant 0 : index
    %12 = vector.load %arg5[%c0_9, %c0_10] : memref<64x1xf32, #tpu.memory_space<vmem>>, vector<64x1xf32>
    %13 = vector.broadcast %12 : vector<64x1xf32> to vector<64x256xf32>
    %14 = arith.addf %11, %13 : vector<64x256xf32>
    %cst_11 = arith.constant 0.000000e+00 : f32
    %15 = vector.broadcast %cst_11 : f32 to vector<64x256xf32>
    %16 = arith.maximumf %14, %15 : vector<64x256xf32>
    %c0_12 = arith.constant 0 : index
    %c0_13 = arith.constant 0 : index
    %17 = vector.load %arg6[%c0_12, %c0_13] : memref<1x64xf32, #tpu.memory_space<vmem>>, vector<1x64xf32>
    %cst_14 = arith.constant dense<0.000000e+00> : vector<1x256xf32>
    %18 = tpu.matmul %17, %16, %cst_14 {dimension_numbers = #tpu.dot_dimension_numbers<[1], [0], [0], [1], [0, 0, 1, 1], [], []>} : vector<1x64xf32>, vector<64x256xf32>, vector<1x256xf32> -> vector<1x256xf32>
    %c0_15 = arith.constant 0 : index
    %c0_16 = arith.constant 0 : index
    %19 = vector.load %arg7[%c0_15, %c0_16] : memref<1x1xf32, #tpu.memory_space<vmem>>, vector<1x1xf32>
    %20 = vector.broadcast %19 : vector<1x1xf32> to vector<1x256xf32>
    %21 = arith.addf %18, %20 : vector<1x256xf32>
    %c0_17 = arith.constant 0 : index
    %c0_18 = arith.constant 0 : index
    %22 = vector.load %arg8[%c0_17, %c0_18] : memref<1x256xf32, #tpu.memory_space<vmem>>, vector<1x256xf32>
    tpu.vector_store %arg8[%c0_17, %c0_18], %21 {strides = array<i32>} : memref<1x256xf32, #tpu.memory_space<vmem>>, vector<1x256xf32>,
    return
  }
  func.func @transform_0(%arg0: i32) -> (i32, i32) {
    %c0_i32 = arith.constant 0 : i32
    %c0_i32_0 = arith.constant 0 : i32
    return %c0_i32, %arg0 : i32, i32
  }
  func.func @transform_1(%arg0: i32) -> (i32, i32) {
    %c0_i32 = arith.constant 0 : i32
    %c0_i32_0 = arith.constant 0 : i32
    %c0_i32_1 = arith.constant 0 : i32
    return %c0_i32, %c0_i32_0 : i32, i32
  }
  func.func @transform_2(%arg0: i32) -> (i32, i32) {
    %c0_i32 = arith.constant 0 : i32
    %c0_i32_0 = arith.constant 0 : i32
    %c0_i32_1 = arith.constant 0 : i32
    return %c0_i32, %c0_i32_0 : i32, i32
  }
  func.func @transform_3(%arg0: i32) -> (i32, i32) {
    %c0_i32 = arith.constant 0 : i32
    %c0_i32_0 = arith.constant 0 : i32
    %c0_i32_1 = arith.constant 0 : i32
    return %c0_i32, %c0_i32_0 : i32, i32
  }
  func.func @transform_4(%arg0: i32) -> (i32, i32) {
    %c0_i32 = arith.constant 0 : i32
    %c0_i32_0 = arith.constant 0 : i32
    %c0_i32_1 = arith.constant 0 : i32
    return %c0_i32, %c0_i32_0 : i32, i32
  }
  func.func @transform_5(%arg0: i32) -> (i32, i32) {
    %c0_i32 = arith.constant 0 : i32
    %c0_i32_0 = arith.constant 0 : i32
    %c0_i32_1 = arith.constant 0 : i32
    return %c0_i32, %c0_i32_0 : i32, i32
  }
  func.func @transform_6(%arg0: i32) -> (i32, i32) {
    %c0_i32 = arith.constant 0 : i32
    %c0_i32_0 = arith.constant 0 : i32
    %c0_i32_1 = arith.constant 0 : i32
    return %c0_i32, %c0_i32_0 : i32, i32
  }
  func.func @transform_7(%arg0: i32) -> (i32, i32) {
    %c0_i32 = arith.constant 0 : i32
    %c0_i32_0 = arith.constant 0 : i32
    return %c0_i32, %arg0 : i32, i32
  }
}

</mosaic_0001>

<bundles_post_ra>
// kernel: tpu_custom_call.1
= control target key start
LH: loop header
LB: loop body
LE: loop exit
PB: predicated region body
PF: predicated region fallthrough
CT: control target
= control target key end

     0   :  { %s702_s0 = inlined_call_operand.vmem [shape: f32[13,256], index: 0, kind: input, shape index: {}]   ;;  %s703_s1 = inlined_call_operand.vmem [shape: bf16[64,13], index: 1, kind: input, shape index: {}]   ;;  %s704_s2 = inlined_call_operand.vmem [shape: f32[64,1], index: 2, kind: input, shape index: {}]   ;;  %s705_s3 = inlined_call_operand.vmem [shape: bf16[64,64], index: 3, kind: input, shape index: {}]   ;;  %s706_s4 = inlined_call_operand.vmem [shape: f32[64,1], index: 4, kind: input, shape index: {}]   ;;  %s707_s5 = inlined_call_operand.vmem [shape: f32[1,64], index: 5, kind: input, shape index: {}]   ;;  %s708_s6 = inlined_call_operand.<no memory space> [shape: f32[1,1], index: 6, kind: input, shape index: {}]   ;;  %s709_s7 = inlined_call_operand.hbm [shape: f32[1,256], index: 7, kind: output, shape index: {}]  }
   0x1   :  { %v12_v0 = vstv %s708_s6 }
   0x2   :  { %13 = vst [vmem:[#allocation2] sm:$0x1] %v12_v0 }
   0x3   :  { %v50_v1 = vld [vmem:[%s704_s2 + $0x30] sm:$0xff]  ;;  %v30_v2 = vld [vmem:[%s702_s0] sm:$0xff]  ;;  %vm125_vm0 = vcmask 1045504   ;;  %v548_v4 = vmov 0   ;;  %vm126_vm1 = vcmask 1046528   ;;  %v31_v6 = vld [vmem:[%s702_s0 + $0x8] sm:$0xff] }
   0x4   :  { %v32_v3 = vld [vmem:[%s702_s0 + $0x10] sm:$0x1f]  ;;  %519 = vset.pattern.permute.xlu0 %v548_v4  ;;  %v33_v7 = vld [vmem:[%s702_s0 + $0x18] sm:$0x1f]  ;;  %520 = vset.pattern.permute.xlu1 %v548_v4  ;;  %v549_v8 = vmov 65535   ;;  %v48_v11 = vld [vmem:[%s704_s2 + $0x20] sm:$0xff] }
   0x5   :  { %v34_v5 = vpack.c.bf16 %v32_v3, %v30_v2  ;;  %84 = vperm.xlu0 %519, %v50_v1   ;;  %v127_v9 = vsel %vm125_vm0, 4294967295, %v549_v8  ;;  %v35_v10 = vpack.c.bf16 %v33_v7, %v31_v6  ;;  %521 = vset.pattern.permute.xlu2 %v548_v4 }
   0x6   :  { %v128_v12 = vsel %vm126_vm1, %v127_v9, 0  ;;  %74 = vperm.xlu1 %520, %v48_v11  }
   0x7   :  { %v130_v13 = vand.u32 %v128_v12, %v34_v5  ;;  %v133_v14 = vand.u32 %v128_v12, %v35_v10 }
   0x8   :  { %14 = vsyncpa [#allocation4], 0  ;;  %v508_v15 = vld [vmem:[%s703_s1] sm:$0xff]  ;;  %vm112_vm2 = vcmask 105472   ;;  %v51_v16 = vld [vmem:[%s704_s2 + $0x38] sm:$0xff]  ;;  %vm293_vm3 = vcmask 523264  }
   0x9   :  { %142 = vmatpush.bf16.msra.mxu0 %v130_v13  ;;  %171 = vmatpush.bf16.msra.mxu1 %v133_v14  ;;  %v49_v17 = vld [vmem:[%s704_s2 + $0x28] sm:$0xff]  ;;  %v44_v18 = vld [vmem:[%s704_s2] sm:$0xff]  ;;  %v231_v21 = vld [vmem:[%s706_s4 + $0x30] sm:$0xff]  ;;  %s550_s30 = smov [#allocation3]   ;;  %s449_s10 = sshll.u32 %s709_s7, 4  ;;  %vm434_vm4 = vcmask 1040384   ;;  %s450_s10 = int_to_ptr.hbm [resolvable:$true] %s449_s10 }
   0xa   :  { %v45_v19 = vld [vmem:[%s704_s2 + $0x8] sm:$0xff]  ;;  %v46_v23 = vld [vmem:[%s704_s2 + $0x10] sm:$0xff]  ;;  %v228_v24 = vld [vmem:[%s706_s4 + $0x18] sm:$0xff]  ;;  %s447_s8 = sshll.u32 %s550_s30, 4  ;;  %s448_s8 = int_to_ptr.vmem [resolvable:$true] %s447_s8 }
   0xb   :  { %v509_v20 = vld [vmem:[%s703_s1 + $0x8] sm:$0xff]  ;;  %64 = vperm.xlu2 %521, %v46_v23   ;;  %v47_v25 = vld [vmem:[%s704_s2 + $0x18] sm:$0xff]  ;;  %v227_v26 = vld [vmem:[%s706_s4 + $0x10] sm:$0xff] }
   0xc   :  { %474 = vmatmul.msk.bf16.vlgmr.msra.gmra.mxu0 %vm112_vm2, %v508_v15  ;;  %478 = vmatmul.msk.bf16.vlgmr.msra.gmra.mxu1 %vm112_vm2, %v508_v15  ;;  %v230_v22 = vld [vmem:[%s706_s4 + $0x28] sm:$0xff]  ;;  %v510_v27 = vld [vmem:[%s703_s1 + $0x10] sm:$0xff]  ;;  %v225_v28 = vld [vmem:[%s706_s4] sm:$0xff] }
   0xd   :  { %89 = vperm.xlu0 %519, %v51_v16   ;;  %v232_v29 = vld [vmem:[%s706_s4 + $0x38] sm:$0xff]  ;;  %v381_v30 = vld [vmem:[#allocation2] sm:$0x1]  ;;  %v226_v33 = vld [vmem:[%s706_s4 + $0x8] sm:$0xff] }
   0xe   :  { %79 = vperm.xlu1 %520, %v49_v17   ;;  %v229_v31 = vld [vmem:[%s706_s4 + $0x20] sm:$0xff]  ;;  %v511_v32 = vld [vmem:[%s703_s1 + $0x18] sm:$0xff] }
  0x13   :  { %69 = vperm.xlu2 %521, %v47_v25  }
  0x15   :  { %54 = vperm.xlu0 %519, %v44_v18  }
  0x16   :  { %59 = vperm.xlu1 %520, %v45_v19  }
  0x1b   :  { %270 = vperm.xlu2 %521, %v232_v29  }
  0x1c   :  { %475 = vmatmul.msk.bf16.gmra.mxu0 %vm112_vm2, %v509_v20  ;;  %479 = vmatmul.msk.bf16.gmra.mxu1 %vm112_vm2, %v509_v20 }
  0x1d   :  { %265 = vperm.xlu0 %519, %v231_v21  }
  0x1e   :  { %260 = vperm.xlu1 %520, %v230_v22  }
  0x23   :  { %255 = vperm.xlu2 %521, %v229_v31  }
  0x25   :  { %250 = vperm.xlu0 %519, %v228_v24  }
  0x26   :  { %245 = vperm.xlu1 %520, %v227_v26  }
  0x2b   :  { %240 = vperm.xlu2 %521, %v226_v33  }
  0x2c   :  { %476 = vmatmul.msk.bf16.gmra.mxu0 %vm112_vm2, %v510_v27  ;;  %480 = vmatmul.msk.bf16.gmra.mxu1 %vm112_vm2, %v510_v27 }
  0x2d   :  { %235 = vperm.xlu0 %519, %v225_v28  }
  0x2e   :  { %384 = vperm.xlu1 %520, %v381_v30  }
  0x3c   :  { %477 = vmatmul.msk.bf16.gmra.mxu0 %vm112_vm2, %v511_v32  ;;  %481 = vmatmul.msk.bf16.gmra.mxu1 %vm112_vm2, %v511_v32 }
  0x65   :  { %v65_v48 = vpop.permute.xlu2 %64 }
  0x6d   :  { %v70_v57 = vpop.permute.xlu2 %69 }
  0x77   :  { %v85_v47 = vpop.permute.xlu0 %84 }
  0x78   :  { %v75_v46 = vpop.permute.xlu1 %74 }
  0x7f   :  { %v90_v52 = vpop.permute.xlu0 %89 }
  0x80   :  { %v80_v51 = vpop.permute.xlu1 %79 }
  0x87   :  { %v55_v15 = vpop.permute.xlu0 %54 }
  0x88   :  { %v60_v6 = vpop.permute.xlu1 %59 }
  0x89   :  { %v144_v34 = vpop.f32.mrf.mxu0  ;;  %v173_v35 = vpop.f32.mrf.mxu1 }
  0x8a   :  { %v145_v22 = vadd.f32 %v144_v34, %v55_v15  ;;  %v174_v23 = vadd.f32 %v173_v35, %v55_v15  ;;  %v513_v34 = vld [vmem:[%s705_s3 + $0x8] sm:$0xff]  ;;  %v514_v35 = vld [vmem:[%s705_s3 + $0x10] sm:$0xff] }
  0x8c   :  { %v193_v30 = vmax.f32 %v145_v22, 0.0  ;;  %v194_v31 = vmax.f32 %v174_v23, 0.0 }
  0x91   :  { %v146_v36 = vpop.f32.mrf.mxu0  ;;  %v175_v37 = vpop.f32.mrf.mxu1 }
  0x92   :  { %v147_v16 = vadd.f32 %v146_v36, %v60_v6  ;;  %v176_v17 = vadd.f32 %v175_v37, %v60_v6  ;;  %v512_v36 = vld [vmem:[%s705_s3] sm:$0xff]  ;;  %v515_v37 = vld [vmem:[%s705_s3 + $0x18] sm:$0xff] }
  0x94   :  { %v195_v26 = vmax.f32 %v147_v16, 0.0  ;;  %v196_v27 = vmax.f32 %v176_v17, 0.0 }
  0x96   :  { %v217_v32 = vpack.c.bf16 %v195_v26, %v193_v30  ;;  %v218_v33 = vpack.c.bf16 %v196_v27, %v194_v31  ;;  %v380_v30 = vld [vmem:[%s707_s5] sm:$0x1] }
  0x99   :  { %v149_v38 = vpop.f32.mrf.mxu0  ;;  %v178_v39 = vpop.f32.mrf.mxu1 }
  0x9a   :  { %v150_v11 = vadd.f32 %v149_v38, %v65_v48  ;;  %v179_v12 = vadd.f32 %v178_v39, %v65_v48 }
  0x9c   :  { %v197_v24 = vmax.f32 %v150_v11, 0.0  ;;  %v198_v25 = vmax.f32 %v179_v12, 0.0 }
  0xa1   :  { %v151_v40 = vpop.f32.mrf.mxu0  ;;  %v180_v41 = vpop.f32.mrf.mxu1 }
  0xa2   :  { %v152_v4 = vadd.f32 %v151_v40, %v70_v57  ;;  %v181_v5 = vadd.f32 %v180_v41, %v70_v57 }
  0xa4   :  { %v199_v18 = vmax.f32 %v152_v4, 0.0  ;;  %v200_v19 = vmax.f32 %v181_v5, 0.0 }
  0xa6   :  { %v219_v28 = vpack.c.bf16 %v199_v18, %v197_v24  ;;  %v220_v29 = vpack.c.bf16 %v200_v19, %v198_v25 }
  0xa9   :  { %v154_v42 = vpop.f32.mrf.mxu0  ;;  %v183_v43 = vpop.f32.mrf.mxu1 }
  0xaa   :  { %v155_v62 = vadd.f32 %v154_v42, %v75_v46  ;;  %v184_v63 = vadd.f32 %v183_v43, %v75_v46 }
  0xac   :  { %v201_v13 = vmax.f32 %v155_v62, 0.0  ;;  %v202_v14 = vmax.f32 %v184_v63, 0.0 }
  0xb1   :  { %v156_v44 = vpop.f32.mrf.mxu0  ;;  %v185_v45 = vpop.f32.mrf.mxu1 }
  0xb2   :  { %v157_v58 = vadd.f32 %v156_v44, %v80_v51  ;;  %v186_v59 = vadd.f32 %v185_v45, %v80_v51  ;;  %v266_v51 = vpop.permute.xlu0 %265 }
  0xb4   :  { %v203_v7 = vmax.f32 %v157_v58, 0.0  ;;  %v204_v8 = vmax.f32 %v186_v59, 0.0 }
  0xb6   :  { %v221_v20 = vpack.c.bf16 %v203_v7, %v201_v13  ;;  %v222_v21 = vpack.c.bf16 %v204_v8, %v202_v14 }
  0xb9   :  { %v159_v49 = vpop.f32.mrf.mxu0  ;;  %v188_v50 = vpop.f32.mrf.mxu1 }
  0xba   :  { %v160_v53 = vadd.f32 %v159_v49, %v85_v47  ;;  %v189_v54 = vadd.f32 %v188_v50, %v85_v47  ;;  %v271_v50 = vpop.permute.xlu2 %270  ;;  %v251_v62 = vpop.permute.xlu0 %250 }
  0xbc   :  { %v205_v0 = vmax.f32 %v160_v53, 0.0  ;;  %v206_v1 = vmax.f32 %v189_v54, 0.0  ;;  %v261_v54 = vpop.permute.xlu1 %260 }
  0xc1   :  { %v161_v55 = vpop.f32.mrf.mxu0  ;;  %v190_v56 = vpop.f32.mrf.mxu1 }
  0xc2   :  { %v162_v60 = vadd.f32 %v161_v55, %v90_v52  ;;  %v191_v61 = vadd.f32 %v190_v56, %v90_v52  ;;  %v256_v55 = vpop.permute.xlu2 %255 }
  0xc4   :  { %v207_v2 = vmax.f32 %v162_v60, 0.0  ;;  %v208_v3 = vmax.f32 %v191_v61, 0.0  ;;  %v246_v11 = vpop.permute.xlu1 %245 }
  0xc6   :  { %v223_v9 = vpack.c.bf16 %v207_v2, %v205_v0  ;;  %v224_v10 = vpack.c.bf16 %v208_v3, %v206_v1 }
  0xc8   :  { %310 = vmatpush.bf16.msra.mxu2 %v223_v9  ;;  %339 = vmatpush.bf16.msra.mxu3 %v224_v10 }
  0xca   :  { %v241_v16 = vpop.permute.xlu2 %240 }
  0xcc   :  { %311 = vmatpush.bf16.msra.mxu2 %v221_v20  ;;  %340 = vmatpush.bf16.msra.mxu3 %v222_v21  ;;  %v236_v21 = vpop.permute.xlu0 %235  ;;  %v385_v31 = vpop.permute.xlu1 %384 }
  0xd0   :  { %312 = vmatpush.bf16.msra.mxu2 %v219_v28  ;;  %341 = vmatpush.bf16.msra.mxu3 %v220_v29 }
  0xd4   :  { %313 = vmatpush.bf16.msra.mxu2 %v217_v32  ;;  %342 = vmatpush.bf16.msra.mxu3 %v218_v33  ;;  %v387_v32 = vperm.slane %v385_v31, 0  ;;  %v437_v33 = vlaneseq }
  0xd6   :  { %vm439_vm5 = vcmp.lt.s32.totalorder %v437_v33, 256 }
  0xd7   :  { %498 = vmatmul.msk.bf16.vlgmr.msra.gmra.mxu2 %vm293_vm3, %v512_v36  ;;  %502 = vmatmul.msk.bf16.vlgmr.msra.gmra.mxu3 %vm293_vm3, %v512_v36 }
  0xe7   :  { %499 = vmatmul.msk.bf16.gmra.mxu2 %vm293_vm3, %v513_v34  ;;  %503 = vmatmul.msk.bf16.gmra.mxu3 %vm293_vm3, %v513_v34 }
  0xf7   :  { %500 = vmatmul.msk.bf16.gmra.mxu2 %vm293_vm3, %v514_v35  ;;  %504 = vmatmul.msk.bf16.gmra.mxu3 %vm293_vm3, %v514_v35 }
 0x107   :  { %501 = vmatmul.msk.bf16.gmra.mxu2 %vm293_vm3, %v515_v37  ;;  %505 = vmatmul.msk.bf16.gmra.mxu3 %vm293_vm3, %v515_v37 }
 0x15a   :  { %v315_v38 = vpop.f32.mrf.mxu2  ;;  %v344_v39 = vpop.f32.mrf.mxu3 }
 0x15b   :  { %v316_v22 = vadd.f32 %v315_v38, %v236_v21  ;;  %v345_v23 = vadd.f32 %v344_v39, %v236_v21 }
 0x15d   :  { %v364_v28 = vmax.f32 %v316_v22, 0.0  ;;  %v365_v29 = vmax.f32 %v345_v23, 0.0 }
 0x162   :  { %v317_v40 = vpop.f32.mrf.mxu2  ;;  %v346_v41 = vpop.f32.mrf.mxu3 }
 0x163   :  { %v318_v17 = vadd.f32 %v317_v40, %v241_v16  ;;  %v347_v18 = vadd.f32 %v346_v41, %v241_v16 }
 0x165   :  { %v366_v26 = vmax.f32 %v318_v17, 0.0  ;;  %v367_v27 = vmax.f32 %v347_v18, 0.0 }
 0x16a   :  { %v320_v42 = vpop.f32.mrf.mxu2  ;;  %v349_v43 = vpop.f32.mrf.mxu3 }
 0x16b   :  { %v321_v12 = vadd.f32 %v320_v42, %v246_v11  ;;  %v350_v13 = vadd.f32 %v349_v43, %v246_v11 }
 0x16d   :  { %v368_v24 = vmax.f32 %v321_v12, 0.0  ;;  %v369_v25 = vmax.f32 %v350_v13, 0.0 }
 0x172   :  { %v322_v44 = vpop.f32.mrf.mxu2  ;;  %v351_v45 = vpop.f32.mrf.mxu3 }
 0x173   :  { %v323_v7 = vadd.f32 %v322_v44, %v251_v62  ;;  %v352_v8 = vadd.f32 %v351_v45, %v251_v62 }
 0x175   :  { %v370_v19 = vmax.f32 %v323_v7, 0.0  ;;  %v371_v20 = vmax.f32 %v352_v8, 0.0 }
 0x17a   :  { %v325_v46 = vpop.f32.mrf.mxu2  ;;  %v354_v47 = vpop.f32.mrf.mxu3 }
 0x17b   :  { %v326_v3 = vadd.f32 %v325_v46, %v256_v55  ;;  %v355_v4 = vadd.f32 %v354_v47, %v256_v55 }
 0x17d   :  { %v372_v14 = vmax.f32 %v326_v3, 0.0  ;;  %v373_v15 = vmax.f32 %v355_v4, 0.0 }
 0x182   :  { %v327_v48 = vpop.f32.mrf.mxu2  ;;  %v356_v49 = vpop.f32.mrf.mxu3 }
 0x183   :  { %v328_v63 = vadd.f32 %v327_v48, %v261_v54  ;;  %v357_v0 = vadd.f32 %v356_v49, %v261_v54 }
 0x185   :  { %v374_v9 = vmax.f32 %v328_v63, 0.0  ;;  %v375_v10 = vmax.f32 %v357_v0, 0.0 }
 0x18a   :  { %v330_v52 = vpop.f32.mrf.mxu2  ;;  %v359_v53 = vpop.f32.mrf.mxu3 }
 0x18b   :  { %v331_v58 = vadd.f32 %v330_v52, %v266_v51  ;;  %v360_v59 = vadd.f32 %v359_v53, %v266_v51 }
 0x18d   :  { %v376_v5 = vmax.f32 %v331_v58, 0.0  ;;  %v377_v6 = vmax.f32 %v360_v59, 0.0 }
 0x192   :  { %v332_v56 = vpop.f32.mrf.mxu2  ;;  %v361_v57 = vpop.f32.mrf.mxu3 }
 0x193   :  { %v333_v60 = vadd.f32 %v332_v56, %v271_v50  ;;  %v362_v61 = vadd.f32 %v361_v57, %v271_v50 }
 0x195   :  { %v378_v1 = vmax.f32 %v333_v60, 0.0  ;;  %v379_v2 = vmax.f32 %v362_v61, 0.0 }
 0x197   :  { %399 = vmatpush.msrb.mxu0 %v378_v1  ;;  %419 = vmatpush.msrb.mxu1 %v379_v2 }
 0x199   :  { %400 = vmatpush.msrb.mxu0 %v376_v5  ;;  %420 = vmatpush.msrb.mxu1 %v377_v6 }
 0x19b   :  { %401 = vmatpush.msrb.mxu0 %v374_v9  ;;  %421 = vmatpush.msrb.mxu1 %v375_v10 }
 0x19d   :  { %402 = vmatpush.msrb.mxu0 %v372_v14  ;;  %422 = vmatpush.msrb.mxu1 %v373_v15 }
 0x19f   :  { %403 = vmatpush.msrb.mxu0 %v370_v19  ;;  %423 = vmatpush.msrb.mxu1 %v371_v20 }
 0x1a1   :  { %404 = vmatpush.msrb.mxu0 %v368_v24  ;;  %424 = vmatpush.msrb.mxu1 %v369_v25 }
 0x1a3   :  { %405 = vmatpush.msrb.mxu0 %v366_v26  ;;  %425 = vmatpush.msrb.mxu1 %v367_v27 }
 0x1a5   :  { %406 = vmatpush.msrb.mxu0 %v364_v28  ;;  %426 = vmatpush.msrb.mxu1 %v365_v29 }
 0x1a6   :  { %506 = vmatmul.msk.f32.vlgmr.msrb.gmra.mxu0 %vm293_vm3, %v380_v30  ;;  %507 = vmatmul.msk.f32.vlgmr.msrb.gmra.mxu1 %vm293_vm3, %v380_v30 }
 0x223   :  { %v408_v36 = vpop.f32.mrf.mxu0  ;;  %v428_v34 = vpop.f32.mrf.mxu1 }
 0x224   :  { %v429_v35 = vadd.f32 %v428_v34, %v387_v32  ;;  %v409_v37 = vadd.f32 %v408_v36, %v387_v32 }
 0x226   :  { %v433_v38 = vrot.slane %v429_v35, 7 }
 0x228   :  { %v435_v39 = vsel %vm434_vm4, %v409_v37, %v433_v38 }
 0x229   :  { %441 = vst.msk [vmem:[#allocation3] sm:$0x3] %vm439_vm5, %v435_v39 }
 0x22a   :  { %452 = dma.vmem_to_hbm [thread:$0]  %s448_s8, 32, %s450_s10, [#allocation4]  }
 0x22b   :  { %546 = dma.done.wait [#allocation4], 32  }
 0x22c   :  { %547 = vsyncadd [#allocation4], 4294967264 }
 0x22d   :  { %457 = vsyncpa [#allocation4], 1 }

</bundles_post_ra>
